<compile_context>
chip_gen: v7x
topology: tpu7x:2x2x1
jax: 0.10.0
libtpu: 0.0.40
codegen_flags: <defaults>
</compile_context>

<pallas_src>
import math
from functools import partial

import jax
import jax.numpy as jnp
from jax.experimental import pallas as pl
from jax.experimental.pallas import tpu as pltpu

_LANE = 128     # vreg lane width
_SUBLANE = 8    # vreg sublane count


# --------------------------------------------------------------------------- #
# Fixed sinusoidal table (same math as the PyTorch __init__).
# --------------------------------------------------------------------------- #
def make_positional_encoding_table(hidden_dim: int, max_len: int = 1000,
                                   dtype=jnp.float32) -> jnp.ndarray:
    assert hidden_dim % 2 == 0, "hidden_dim must be even (matches the PyTorch module)"
    position = jnp.arange(0, max_len, dtype=jnp.float32)[:, None]            # (max_len, 1)
    div_term = jnp.exp(
        jnp.arange(0, hidden_dim, 2, dtype=jnp.float32)
        * (-math.log(10000.0) / hidden_dim)
    )                                                                         # (hidden_dim//2,)
    pe = jnp.zeros((max_len, hidden_dim), dtype=jnp.float32)
    pe = pe.at[:, 0::2].set(jnp.sin(position * div_term))
    pe = pe.at[:, 1::2].set(jnp.cos(position * div_term))
    return pe[:, None, :].astype(dtype)                                       # (max_len, 1, hidden_dim)


# --------------------------------------------------------------------------- #
# Kernels.
# --------------------------------------------------------------------------- #
def _add_pe_3d_kernel(x_ref, pe_ref, o_ref):
    # x (ts, tb, th) + pe (ts, 1, th): batch broadcast happens in the VPU add.
    o_ref[...] = (x_ref[...] + pe_ref[...]).astype(o_ref.dtype)


def _replicate_last(v, reps: int):
    """Repeat `v` `reps` times along the last (lane) axis via concat-doubling."""
    width = v.shape[-1]
    out = v
    n = 1
    while n < reps:
        take = min(n, reps - n)
        piece = out if take == n else out[..., : take * width]
        out = jnp.concatenate([out, piece], axis=-1)
        n += take
    return out


def _add_pe_fold_kernel(x_ref, pe_ref, o_ref, *, batch: int):
    # x (ts, B*H) + tile(pe (ts, H), B).  Replication runs on otherwise-idle
    # vector slots; no HBM-materialized broadcast of pe.
    pe_rep = _replicate_last(pe_ref[...], batch) if batch > 1 else pe_ref[...]
    o_ref[...] = (x_ref[...] + pe_rep).astype(o_ref.dtype)


# --------------------------------------------------------------------------- #
# Tiling helpers.
# --------------------------------------------------------------------------- #
def _vmem_budget_bytes() -> int:
    """Scoped-VMEM budget we are willing to request (<= 3/4 of physical)."""
    try:
        cap = int(pltpu.get_tpu_info().vmem_capacity_bytes)
    except Exception:
        cap = 64 << 20  # conservative (v7x-sized) fallback
    return min((cap * 3) // 4, 96 << 20)


def _pick_tiles_3d(S: int, B: int, H: int, itemsize: int, target_bytes: int):
    """(ts, tb, th) so one x/out block is ~target_bytes and layout-legal."""
    # hidden (lane) tile: full H if a minimal (1, min(B,8), H) slab fits,
    # otherwise a multiple of 128.
    tb_probe = min(B, _SUBLANE)
    th = H
    if tb_probe * H * itemsize > target_bytes and H > _LANE:
        th = max(_LANE, (target_bytes // (tb_probe * itemsize)) // _LANE * _LANE)
        th = min(th, H)
    # batch (sublane) tile: multiple of 8, or the full (possibly small) B.
    if B <= _SUBLANE:
        tb = B
    else:
        tb = min(B, max(1, target_bytes // (th * itemsize)))
        if tb < B:
            tb = max(_SUBLANE, (tb // _SUBLANE) * _SUBLANE)
            tb = min(tb, B)
    # seq tile: no alignment constraint (third-from-last dim).
    ts = min(S, max(1, target_bytes // (tb * th * itemsize)))
    return ts, tb, th


def _pick_tile_fold(S: int, row_elems: int, itemsize: int, target_bytes: int) -> int:
    """Seq rows per 2-D block (~target_bytes); multiple of 8 or the full S."""
    ts = max(1, target_bytes // max(1, row_elems * itemsize))
    if ts >= S:
        return S
    ts = max(_SUBLANE, (ts // _SUBLANE) * _SUBLANE)
    return int(min(ts, S))


# --------------------------------------------------------------------------- #
# Forward.
# --------------------------------------------------------------------------- #
def positional_encoding_forward(x: jnp.ndarray, pe: jnp.ndarray,
                                *, in_place: bool = False) -> jnp.ndarray:
    """x: (S, B, H); pe: (max_len, 1, H).  Returns x + pe[:S] via Pallas."""
    S, B, H = x.shape
    max_len = pe.shape[0]
    if S > max_len:
        raise ValueError(f"seq_len={S} exceeds positional-encoding max_len={max_len}")

    dtype = x.dtype
    itemsize = jnp.dtype(dtype).itemsize

    # Keep the table un-sliced / un-cast when it is already in the activation
    # dtype (no per-call XLA op on pe); only slice+cast if dtypes differ.
    pe_tab = pe if pe.dtype == dtype else pe[:S].astype(dtype)

    budget = _vmem_budget_bytes()
    target = min(8 << 20, budget // 8)           # ~6 MiB on v7x, 8 MiB on v5e/v6e
    cparams_kw = dict(vmem_limit_bytes=int(budget))

    cost = pl.CostEstimate(
        flops=S * B * H,
        transcendentals=0,
        bytes_accessed=int((2 * S * B * H + S * H) * itemsize),
    )
    io_alias = {0: 0} if in_place else {}

    # ---- lane-folded 2-D path: small batch and/or small hidden ------------ #
    row_bytes = B * H * itemsize
    target_fold = min(4 << 20, target)           # keep in-kernel pe replica cheap
    fold_ok = (row_bytes * _SUBLANE <= target_fold) or (row_bytes * S <= target_fold)

    if (H < _LANE or B < _SUBLANE) and fold_ok:
        BH = B * H
        ts = _pick_tile_fold(S, BH, itemsize, target_fold)
        x2 = x.reshape(S, BH)                                   # free (contiguous)
        pe2 = pe_tab.reshape(pe_tab.shape[0], H)                # drop singleton batch dim
        out2 = pl.pallas_call(
            partial(_add_pe_fold_kernel, batch=B),
            out_shape=jax.ShapeDtypeStruct((S, BH), dtype),
            grid=(pl.cdiv(S, ts),),
            in_specs=[
                pl.BlockSpec((ts, BH), lambda i: (i, 0)),
                pl.BlockSpec((ts, H), lambda i: (i, 0)),
            ],
            out_specs=pl.BlockSpec((ts, BH), lambda i: (i, 0)),
            compiler_params=pltpu.CompilerParams(
                dimension_semantics=("parallel",), **cparams_kw),
            cost_estimate=cost,
            input_output_aliases=io_alias,
        )(x2, pe2)
        return out2.reshape(S, B, H)

    # ---- general 3-D path: tile seq x batch x hidden ----------------------- #
    ts, tb, th = _pick_tiles_3d(S, B, H, itemsize, target)
    grid = (pl.cdiv(S, ts), pl.cdiv(B, tb), pl.cdiv(H, th))
    return pl.pallas_call(
        _add_pe_3d_kernel,
        out_shape=jax.ShapeDtypeStruct((S, B, H), dtype),
        grid=grid,
        in_specs=[
            pl.BlockSpec((ts, tb, th), lambda i, j, k: (i, j, k)),
            pl.BlockSpec((ts, 1, th), lambda i, j, k: (i, 0, k)),
        ],
        out_specs=pl.BlockSpec((ts, tb, th), lambda i, j, k: (i, j, k)),
        compiler_params=pltpu.CompilerParams(
            dimension_semantics=("parallel", "parallel", "parallel"), **cparams_kw),
        cost_estimate=cost,
        input_output_aliases=io_alias,
    )(x, pe_tab)


# --------------------------------------------------------------------------- #
# Self-test.
# --------------------------------------------------------------------------- #
if __name__ == "__main__":
    key = jax.random.PRNGKey(0)
    max_len = 1000

    # 1) Module-sized small shape (hits the lane-folded path: H < 128, B < 8).
    seq_len, batch, hidden_dim = 8, 2, 32
    x = jax.random.normal(key, (seq_len, batch, hidden_dim), dtype=jnp.float32)
    pe = make_positional_encoding_table(hidden_dim, max_len=max_len, dtype=x.dtype)
    ref = x + pe[:seq_len]                      # pure-JAX reference (PyTorch forward)
    out = jax.block_until_ready(positional_encoding_forward(x, pe))
    assert out.shape == x.shape
    assert jnp.allclose(out, ref, atol=1e-6, rtol=1e-6)

    # 2) Small shape that exercises the general 3-D tiled path (H >= 128, B >= 8).
    k2 = jax.random.PRNGKey(1)
    s2, b2, h2 = 16, 8, 128
    x2 = jax.random.normal(k2, (s2, b2, h2), dtype=jnp.float32)
    pe2 = make_positional_encoding_table(h2, max_len=max_len, dtype=x2.dtype)
    ref2 = x2 + pe2[:s2]
    out2 = jax.block_until_ready(positional_encoding_forward(x2, pe2))
    assert out2.shape == x2.shape
    assert jnp.allclose(out2, ref2, atol=1e-6, rtol=1e-6)

    print("KERNEL_OK")
</pallas_src>

<mosaic_0001>
module attributes {stable_mosaic.version = 11 : i64} {
  func.func @_add_pe_fold_kernel(%arg0: i32, %arg1: memref<8x64xf32, #tpu.memory_space<vmem>>, %arg2: memref<8x32xf32, #tpu.memory_space<vmem>>, %arg3: memref<8x64xf32, #tpu.memory_space<vmem>>) attributes {dimension_semantics = [#tpu.dimension_semantics<parallel>], iteration_bounds = array<i64: 1>, scalar_prefetch = 0 : i64, scratch_operands = 0 : i64, tpu.core_type = #tpu.core_type<tc>, window_params = [{transform_indices = @transform_0, window_bounds = array<i64: 8, 64>}, {transform_indices = @transform_1, window_bounds = array<i64: 8, 32>}, {transform_indices = @transform_2, window_bounds = array<i64: 8, 64>}]} {
    %c0 = arith.constant 0 : index
    %c0_0 = arith.constant 0 : index
    %0 = vector.load %arg2[%c0, %c0_0] : memref<8x32xf32, #tpu.memory_space<vmem>>, vector<8x32xf32>
    %1 = tpu.concatenate %0, %0 in 1 : vector<8x32xf32>, vector<8x32xf32> -> vector<8x64xf32>
    %c0_1 = arith.constant 0 : index
    %c0_2 = arith.constant 0 : index
    %2 = vector.load %arg1[%c0_1, %c0_2] : memref<8x64xf32, #tpu.memory_space<vmem>>, vector<8x64xf32>
    %3 = arith.addf %2, %1 : vector<8x64xf32>
    %c0_3 = arith.constant 0 : index
    %c0_4 = arith.constant 0 : index
    %4 = vector.load %arg3[%c0_3, %c0_4] : memref<8x64xf32, #tpu.memory_space<vmem>>, vector<8x64xf32>
    tpu.vector_store %arg3[%c0_3, %c0_4], %3 {strides = array<i32>} : memref<8x64xf32, #tpu.memory_space<vmem>>, vector<8x64xf32>,
    return
  }
  func.func @transform_0(%arg0: i32) -> (i32, i32) {
    %c0_i32 = arith.constant 0 : i32
    %c0_i32_0 = arith.constant 0 : i32
    return %arg0, %c0_i32 : i32, i32
  }
  func.func @transform_1(%arg0: i32) -> (i32, i32) {
    %c0_i32 = arith.constant 0 : i32
    %c0_i32_0 = arith.constant 0 : i32
    return %arg0, %c0_i32 : i32, i32
  }
  func.func @transform_2(%arg0: i32) -> (i32, i32) {
    %c0_i32 = arith.constant 0 : i32
    %c0_i32_0 = arith.constant 0 : i32
    return %arg0, %c0_i32 : i32, i32
  }
}

</mosaic_0001>

<bundles_post_ra>
// kernel: tpu_custom_call.1
= control target key start
LH: loop header
LB: loop body
LE: loop exit
PB: predicated region body
PF: predicated region fallthrough
CT: control target
= control target key end

     0   :  { %s98_s0 = inlined_call_operand.vmem [shape: f32[8,64], index: 0, kind: input, shape index: {}]   ;;  %s99_s1 = inlined_call_operand.vmem [shape: f32[1000,32], index: 1, kind: input, shape index: {}]   ;;  %s100_s2 = inlined_call_operand.hbm [shape: f32[8,64], index: 2, kind: output, shape index: {}]  }
   0x1   :  { %v12_v0 = vld [vmem:[%s99_s1] sm:$0xff] }
   0x2   :  { %7 = vsyncpa [#allocation3], 0  ;;  %s63_s11 = smov 32   ;;  %vm17_vm0 = vcmask 261120   ;;  %v19_v1 = vld [vmem:[%s98_s0] sm:$0xff]  ;;  %s64_s14 = smov [#allocation2]  }
   0x3   :  { %14 = vrot.lane.b32.xlu0 %v12_v0, %s63_s11  ;;  %s29_s15 = sshll.u32 %s64_s14, 4  ;;  %vm21_vm1 = vcmask 523264   ;;  %s30_s15 = int_to_ptr.vmem [resolvable:$true] %s29_s15 }
   0x4   :  { %s39_s16 = scalar_lea.vmem %s30_s15, 128  ;;  %p44_p1 = scmp.lt.s32.totalorder %s30_s15, %s30_s15 }
   0x5   :  { %p40_p0 = scmp.ne.s32.totalorder %s30_s15, %s39_s16  ;;  %p45_p2 = scmp.lt.s32.totalorder %s39_s16, %s39_s16 }
   0x7   :  { %p46_p3 = por %p45_p2, %p44_p1 }
   0x9   :  { %p47_p4 = pnand %p46_p3, %p40_p0 }
  0x75   :  { %v15_v2 = vpop.permute.xlu0 %14 }
  0x76   :  { %v18_v3 = vsel %vm17_vm0, %v12_v0, %v15_v2 }
  0x77   :  { %v20_v4 = vadd.f32 %v19_v1, %v18_v3 }
  0x79   :  { %22 = vst.msk [vmem:[#allocation2] sm:$0xff] %vm21_vm1, %v20_v4 }
  0x7a   :  { %50 = shalt.err (!%p47_p4)
}
  0x7b   :  { %s51_s18 = scalar_lea.hbm %s100_s2, 128 }
  0x7c   :  { %p52_p5 = scmp.ne.s32.totalorder %s100_s2, %s51_s18  ;;  %p55_p6 = scmp.lt.u32.totalorder %s51_s18, %s100_s2 }
  0x7e   :  { %p57_p7 = pnand %p55_p6, %p52_p5 }
  0x80   :  { %60 = shalt.err (!%p57_p7)
}
  0x81   :  { %32 = dma.vmem_to_hbm [thread:$0]  %s30_s15, 128, %s100_s2, [#allocation3]  }
  0x82   :  { %61 = dma.done.wait [#allocation3], 128  }
  0x83   :  { %62 = vsyncadd [#allocation3], 4294967168 }
  0x84   :  { %36 = vsyncpa [#allocation3], 1 }

</bundles_post_ra>
